<compile_context>
chip_gen: v5e
topology: v5e:2x2
jax: 0.10.0
libtpu: 0.0.40
codegen_flags: <defaults>
</compile_context>

<pallas_src>
import functools

import jax
import jax.numpy as jnp
from jax.experimental import pallas as pl
from jax.experimental.pallas import tpu as pltpu

_LANE = 128
_SUBLANE = 8
_MIB = 1024 * 1024


def _round_up(x, m):
    return (x + m - 1) // m * m


def _vmem_capacity_bytes():
    """Per-core VMEM capacity; conservative 64 MiB (v7x) fallback."""
    try:
        cap = getattr(pltpu.get_tpu_info(), "vmem_capacity_bytes", None)
        if cap:
            return int(cap)
    except Exception:
        pass
    return 64 * _MIB


def _mlp_kernel(x_ref, w1_ref, b1_ref, w2_ref, b2_ref, o_ref, *, approx_sigmoid):
    """o = sigmoid(relu(x @ W1 + b1) @ W2 + b2) for one (TB, D) batch tile.

    MXU operands may be bf16 (dtype of w1_ref / w2_ref); accumulation and the
    elementwise tail (bias, ReLU, sigmoid) stay in f32.  The streamed x tile is
    cast in-kernel so the wrapper never rewrites x in HBM.
    """
    x = x_ref[...].astype(w1_ref.dtype)
    h = jnp.dot(x, w1_ref[...], preferred_element_type=jnp.float32)
    h = jnp.maximum(h + b1_ref[...], 0.0)                       # b1: (1, Hp), f32
    y = jnp.dot(h.astype(w2_ref.dtype), w2_ref[...],
                preferred_element_type=jnp.float32)
    y = y + b2_ref[...]                                         # b2: (1, D), f32
    if approx_sigmoid:
        # exp + approximate reciprocal both land on the EUP slot.
        o = pl.reciprocal(1.0 + jnp.exp(-y), approx=True)
    else:
        o = jax.nn.sigmoid(y)
    o_ref[...] = o.astype(o_ref.dtype)


def prepare_params(w1, b1, w2, b2, *, matmul_dtype=None):
    """Pad the hidden dim to a lane multiple and cast weights ONCE (cache & reuse).

    w1: (D, H) fc1 weight stored [in, out];  b1: (H,) or (1, H).
    w2: (H, D) i2o weight stored [in, out];  b2: (D,) or (1, D).
    """
    w1 = jnp.asarray(w1)
    w2 = jnp.asarray(w2)
    D, H = w1.shape
    assert w2.shape == (H, D)
    cdt = jnp.dtype(matmul_dtype) if matmul_dtype is not None else w1.dtype
    Hp = _round_up(H, _LANE)

    b1 = jnp.asarray(b1, jnp.float32).reshape(1, H)
    b2 = jnp.asarray(b2, jnp.float32).reshape(1, D)

    if Hp == H:
        w1p = w1.astype(cdt)
        w2p = w2.astype(cdt)
        b1p = b1
    else:  # zero padding of the hidden dim is numerically exact
        w1p = jnp.zeros((D, Hp), cdt).at[:, :H].set(w1.astype(cdt))
        w2p = jnp.zeros((Hp, D), cdt).at[:H, :].set(w2.astype(cdt))
        b1p = jnp.zeros((1, Hp), jnp.float32).at[:, :H].set(b1)

    return {"w1": w1p, "b1": b1p, "w2": w2p, "b2": b2, "D": D, "Hp": Hp}


def simple_neural_network_forward(x, params, *, block_batch=None,
                                  out_dtype=None, approx_sigmoid=False):
    """Fused forward pass: sigmoid(relu(x @ w1 + b1) @ w2 + b2).

    x:           (B, D) activations (any float dtype; cast happens in-kernel).
    params:      output of prepare_params().
    block_batch: optional batch-tile override (rows per grid step); default auto.
    out_dtype:   optional output dtype (e.g. jnp.bfloat16 to halve store bytes).
    """
    B, D = x.shape
    assert D == params["D"], "feature dim mismatch between x and params"
    w1, b1, w2, b2 = params["w1"], params["b1"], params["w2"], params["b2"]
    Hp = params["Hp"]

    out_dtype = jnp.dtype(out_dtype) if out_dtype is not None else x.dtype
    x_isz = x.dtype.itemsize
    out_isz = out_dtype.itemsize
    w_isz = w1.dtype.itemsize

    lane_D = _round_up(D, _LANE)           # lane-padded footprint of a row in VMEM
    Dp8 = _round_up(D, _SUBLANE)

    # Sublane alignment for the streamed tensors (packed rows for 2-byte dtypes).
    align = 16 if min(x_isz, out_isz) <= 2 else _SUBLANE

    # ---- VMEM budget (per core, headroom for compiler scratch) ----------------
    vmem_cap = _vmem_capacity_bytes()
    # Resident weights/biases (assume they may be double-buffered by the runtime).
    resident = 2 * (Dp8 * Hp + Hp * lane_D) * w_isz + 2 * (Hp + lane_D) * 4
    # Per batch-row VMEM: double-buffered x & o tiles (lane-padded layout) plus
    # the f32 intermediates h (row x Hp) and y (row x lane_D).
    per_row = 2 * lane_D * (x_isz + out_isz) + (Hp + lane_D) * 4
    usable = int(min(vmem_cap, 128 * _MIB) * 0.7)
    tile_budget = max(usable - resident, 4 * _MIB)

    # ---- Batch tile size -------------------------------------------------------
    if block_batch is None:
        # Target ~2 MiB of streamed x per tile so per-grid-step overhead is noise.
        tb = pl.cdiv(2 * _MIB, lane_D * x_isz)
    else:
        tb = int(block_batch)
    tb = _round_up(max(tb, align), align)
    # Keep >= 2 grid steps when the batch allows it (megacore + pipeline overlap).
    tb = min(tb, _round_up(pl.cdiv(B, 2), align))
    # Never exceed the (sublane-rounded) batch itself.
    tb = min(tb, _round_up(B, _SUBLANE))
    # Clamp to the VMEM budget.
    tb_max = max(_SUBLANE, (tile_budget // per_row) // _SUBLANE * _SUBLANE)
    tb = max(_SUBLANE, min(tb, tb_max))
    # TODO(synk): for extremely large D a K-tiled (feature-blocked) variant would
    # be needed; this module has H=64 and moderate D so whole-row tiles suffice.

    grid = (pl.cdiv(B, tb),)

    est = resident + tb * per_row
    vmem_limit = int(min(max(2 * est, 32 * _MIB), vmem_cap - 8 * _MIB))

    kernel = functools.partial(_mlp_kernel, approx_sigmoid=approx_sigmoid)

    return pl.pallas_call(
        kernel,
        out_shape=jax.ShapeDtypeStruct((B, D), out_dtype),
        grid=grid,
        in_specs=[
            pl.BlockSpec((tb, D), lambda i: (i, 0)),   # x tile (streamed; ragged edge masked)
            pl.BlockSpec((D, Hp), lambda i: (0, 0)),   # W1 (resident)
            pl.BlockSpec((1, Hp), lambda i: (0, 0)),   # b1 (resident, f32)
            pl.BlockSpec((Hp, D), lambda i: (0, 0)),   # W2 (resident)
            pl.BlockSpec((1, D), lambda i: (0, 0)),    # b2 (resident, f32)
        ],
        out_specs=pl.BlockSpec((tb, D), lambda i: (i, 0)),
        compiler_params=pltpu.CompilerParams(
            dimension_semantics=("parallel",),
            vmem_limit_bytes=vmem_limit,
        ),
    )(x, w1, b1, w2, b2)


def init_params(key, input_dim, hidden=64, dtype=jnp.float32):
    """Deterministic init mimicking nn.Linear's uniform(-1/sqrt(fan_in), 1/sqrt(fan_in))."""
    k1, k2, k3, k4 = jax.random.split(key, 4)
    bound1 = 1.0 / (input_dim ** 0.5)
    bound2 = 1.0 / (hidden ** 0.5)
    # stored as [in, out] (i.e. PyTorch weight transposed)
    w1 = jax.random.uniform(k1, (input_dim, hidden), dtype, -bound1, bound1)
    b1 = jax.random.uniform(k2, (1, hidden), dtype, -bound1, bound1)
    w2 = jax.random.uniform(k3, (hidden, input_dim), dtype, -bound2, bound2)
    b2 = jax.random.uniform(k4, (1, input_dim), dtype, -bound2, bound2)
    return w1, b1, w2, b2


if __name__ == "__main__":
    key = jax.random.PRNGKey(0)
    batch, input_dim = 8, 16
    kx, kp, kx2, kp2 = jax.random.split(key, 4)

    x = jax.random.normal(kx, (batch, input_dim), jnp.float32)
    w1, b1, w2, b2 = init_params(kp, input_dim)

    # Plain-JAX reference (same math as the PyTorch forward).
    ref = jax.nn.sigmoid(jnp.maximum(x @ w1 + b1, 0.0) @ w2 + b2)

    # 1) f32 end to end (small D: whole-row tiles, no pad/transpose/cast of x).
    params = prepare_params(w1, b1, w2, b2)
    out = jax.block_until_ready(simple_neural_network_forward(x, params))
    assert out.shape == (batch, input_dim)
    assert jnp.allclose(out, ref, atol=1e-5, rtol=1e-5)

    # 2) bf16 MXU operands (weights pre-cast once; x cast in-kernel) plus the
    #    EUP sigmoid (exp + approx reciprocal); f32 accumulation throughout.
    params_bf16 = prepare_params(w1, b1, w2, b2, matmul_dtype=jnp.bfloat16)
    out_bf16 = jax.block_until_ready(
        simple_neural_network_forward(x, params_bf16, approx_sigmoid=True))
    assert jnp.allclose(out_bf16, ref, atol=2e-2, rtol=2e-2)

    # 3) Larger feature dim + ragged batch: multi-step grid (>=2 steps -> megacore
    #    + double-buffering) with the final partial tile handled by Pallas
    #    boundary masking — no wrapper-side jnp.pad of x or the output.
    batch2, dim2 = 200, 256
    x2 = jax.random.normal(kx2, (batch2, dim2), jnp.float32)
    w1b, b1b, w2b, b2b = init_params(kp2, dim2)
    ref2 = jax.nn.sigmoid(jnp.maximum(x2 @ w1b + b1b, 0.0) @ w2b + b2b)
    params2 = prepare_params(w1b, b1b, w2b, b2b)
    out2 = jax.block_until_ready(
        simple_neural_network_forward(x2, params2, block_batch=64))
    assert out2.shape == (batch2, dim2)
    assert jnp.allclose(out2, ref2, atol=2e-3, rtol=2e-3)

    print("KERNEL_OK")
</pallas_src>

<mosaic_0001>
module attributes {stable_mosaic.version = 11 : i64} {
  func.func @_mlp_kernel(%arg0: i32, %arg1: memref<8x16xf32, #tpu.memory_space<vmem>>, %arg2: memref<16x128xf32, #tpu.memory_space<vmem>>, %arg3: memref<1x128xf32, #tpu.memory_space<vmem>>, %arg4: memref<128x16xf32, #tpu.memory_space<vmem>>, %arg5: memref<1x16xf32, #tpu.memory_space<vmem>>, %arg6: memref<8x16xf32, #tpu.memory_space<vmem>>) attributes {dimension_semantics = [#tpu.dimension_semantics<parallel>], iteration_bounds = array<i64: 1>, scalar_prefetch = 0 : i64, scratch_operands = 0 : i64, tpu.core_type = #tpu.core_type<tc>, window_params = [{transform_indices = @transform_0, window_bounds = array<i64: 8, 16>}, {pipeline_mode = #tpu.pipeline_mode<synchronous>, transform_indices = @transform_1, window_bounds = array<i64: 16, 128>}, {pipeline_mode = #tpu.pipeline_mode<synchronous>, transform_indices = @transform_2, window_bounds = array<i64: 1, 128>}, {pipeline_mode = #tpu.pipeline_mode<synchronous>, transform_indices = @transform_3, window_bounds = array<i64: 128, 16>}, {pipeline_mode = #tpu.pipeline_mode<synchronous>, transform_indices = @transform_4, window_bounds = array<i64: 1, 16>}, {transform_indices = @transform_5, window_bounds = array<i64: 8, 16>}]} {
    %c0 = arith.constant 0 : index
    %c0_0 = arith.constant 0 : index
    %0 = vector.load %arg1[%c0, %c0_0] : memref<8x16xf32, #tpu.memory_space<vmem>>, vector<8x16xf32>
    %c0_1 = arith.constant 0 : index
    %c0_2 = arith.constant 0 : index
    %1 = vector.load %arg2[%c0_1, %c0_2] : memref<16x128xf32, #tpu.memory_space<vmem>>, vector<16x128xf32>
    %cst = arith.constant dense<0.000000e+00> : vector<8x128xf32>
    %2 = tpu.matmul %0, %1, %cst {dimension_numbers = #tpu.dot_dimension_numbers<[1], [0], [0], [1], [0, 0, 1, 1], [], []>} : vector<8x16xf32>, vector<16x128xf32>, vector<8x128xf32> -> vector<8x128xf32>
    %c0_3 = arith.constant 0 : index
    %c0_4 = arith.constant 0 : index
    %3 = vector.load %arg3[%c0_3, %c0_4] : memref<1x128xf32, #tpu.memory_space<vmem>>, vector<1x128xf32>
    %4 = vector.broadcast %3 : vector<1x128xf32> to vector<8x128xf32>
    %5 = arith.addf %2, %4 : vector<8x128xf32>
    %cst_5 = arith.constant 0.000000e+00 : f32
    %6 = vector.broadcast %cst_5 : f32 to vector<8x128xf32>
    %7 = arith.maximumf %5, %6 : vector<8x128xf32>
    %c0_6 = arith.constant 0 : index
    %c0_7 = arith.constant 0 : index
    %8 = vector.load %arg4[%c0_6, %c0_7] : memref<128x16xf32, #tpu.memory_space<vmem>>, vector<128x16xf32>
    %cst_8 = arith.constant dense<0.000000e+00> : vector<8x16xf32>
    %9 = tpu.matmul %7, %8, %cst_8 {dimension_numbers = #tpu.dot_dimension_numbers<[1], [0], [0], [1], [0, 0, 1, 1], [], []>} : vector<8x128xf32>, vector<128x16xf32>, vector<8x16xf32> -> vector<8x16xf32>
    %c0_9 = arith.constant 0 : index
    %c0_10 = arith.constant 0 : index
    %10 = vector.load %arg5[%c0_9, %c0_10] : memref<1x16xf32, #tpu.memory_space<vmem>>, vector<1x16xf32>
    %11 = vector.broadcast %10 : vector<1x16xf32> to vector<8x16xf32>
    %12 = arith.addf %9, %11 : vector<8x16xf32>
    %13 = arith.negf %12 : vector<8x16xf32>
    %14 = math.exp %13 : vector<8x16xf32>
    %cst_11 = arith.constant 1.000000e+00 : f32
    %15 = vector.broadcast %cst_11 : f32 to vector<8x16xf32>
    %16 = arith.addf %15, %14 : vector<8x16xf32>
    %17 = arith.divf %15, %16 : vector<8x16xf32>
    %c0_12 = arith.constant 0 : index
    %c0_13 = arith.constant 0 : index
    %18 = vector.load %arg6[%c0_12, %c0_13] : memref<8x16xf32, #tpu.memory_space<vmem>>, vector<8x16xf32>
    tpu.vector_store %arg6[%c0_12, %c0_13], %17 {strides = array<i32>} : memref<8x16xf32, #tpu.memory_space<vmem>>, vector<8x16xf32>,
    return
  }
  func.func @transform_0(%arg0: i32) -> (i32, i32) {
    %c0_i32 = arith.constant 0 : i32
    %c0_i32_0 = arith.constant 0 : i32
    return %arg0, %c0_i32 : i32, i32
  }
  func.func @transform_1(%arg0: i32) -> (i32, i32) {
    %c0_i32 = arith.constant 0 : i32
    %c0_i32_0 = arith.constant 0 : i32
    %c0_i32_1 = arith.constant 0 : i32
    return %c0_i32, %c0_i32_0 : i32, i32
  }
  func.func @transform_2(%arg0: i32) -> (i32, i32) {
    %c0_i32 = arith.constant 0 : i32
    %c0_i32_0 = arith.constant 0 : i32
    %c0_i32_1 = arith.constant 0 : i32
    return %c0_i32, %c0_i32_0 : i32, i32
  }
  func.func @transform_3(%arg0: i32) -> (i32, i32) {
    %c0_i32 = arith.constant 0 : i32
    %c0_i32_0 = arith.constant 0 : i32
    %c0_i32_1 = arith.constant 0 : i32
    return %c0_i32, %c0_i32_0 : i32, i32
  }
  func.func @transform_4(%arg0: i32) -> (i32, i32) {
    %c0_i32 = arith.constant 0 : i32
    %c0_i32_0 = arith.constant 0 : i32
    %c0_i32_1 = arith.constant 0 : i32
    return %c0_i32, %c0_i32_0 : i32, i32
  }
  func.func @transform_5(%arg0: i32) -> (i32, i32) {
    %c0_i32 = arith.constant 0 : i32
    %c0_i32_0 = arith.constant 0 : i32
    return %arg0, %c0_i32 : i32, i32
  }
}

</mosaic_0001>

<bundles_post_ra>
// kernel: tpu_custom_call.1
= control target key start
LH: loop header
LB: loop body
LE: loop exit
PB: predicated region body
PF: predicated region fallthrough
CT: control target
= control target key end

     0   :  { %vm28_vm0 = vcmask 130048   ;;  %s263_s0 = inlined_call_operand.vmem [shape: f32[8,16], index: 0, kind: input, shape index: {}]   ;;  %s264_s1 = inlined_call_operand.vmem [shape: f32[16,128], index: 1, kind: input, shape index: {}]   ;;  %s265_s2 = inlined_call_operand.vmem [shape: f32[1,128], index: 2, kind: input, shape index: {}]   ;;  %s266_s3 = inlined_call_operand.vmem [shape: f32[128,16], index: 3, kind: input, shape index: {}]   ;;  %s267_s4 = inlined_call_operand.vmem [shape: f32[1,16], index: 4, kind: input, shape index: {}]   ;;  %s268_s5 = inlined_call_operand.hbm [shape: f32[8,16], index: 5, kind: output, shape index: {}]  }
   0x1   :  { %v23_v0 = vld [vmem:[%s264_s1 + $0x8] sm:$0xff]  ;;  %v22_v1 = vld [vmem:[%s264_s1] sm:$0xff]  ;;  %v68_v3 = vld [vmem:[%s266_s3 + $0x78] sm:$0xff] }
   0x2   :  { %46 = vmatpush.msra.mxu0 %v23_v0  ;;  %v21_v2 = vld [vmem:[%s263_s0] sm:$0xff]  ;;  %v67_v4 = vld [vmem:[%s266_s3 + $0x70] sm:$0xff]  ;;  %73 = vmatpush.msra.mxu1 %v68_v3  ;;  %v66_v5 = vld [vmem:[%s266_s3 + $0x68] sm:$0xff] }
   0x3   :  { %v65_v6 = vld [vmem:[%s266_s3 + $0x60] sm:$0xff] }
   0x4   :  { %47 = vmatpush.msra.mxu0 %v22_v1  ;;  %74 = vmatpush.msra.mxu1 %v67_v4 }
   0x5   :  { %129 = vmatmul.msk.f32.vlgmr.msra.gmra.mxu0 %vm28_vm0, %v21_v2 }
   0x6   :  { %75 = vmatpush.msra.mxu1 %v66_v5 }
   0x7   :  { %10 = vsyncpa [#allocation3], 0  ;;  %v64_v7 = vld [vmem:[%s266_s3 + $0x58] sm:$0xff]  ;;  %v63_v8 = vld [vmem:[%s266_s3 + $0x50] sm:$0xff] }
   0x8   :  { %76 = vmatpush.msra.mxu1 %v65_v6  ;;  %v62_v9 = vld [vmem:[%s266_s3 + $0x48] sm:$0xff]  ;;  %v61_v10 = vld [vmem:[%s266_s3 + $0x40] sm:$0xff]  ;;  %v60_v11 = vld [vmem:[%s266_s3 + $0x38] sm:$0xff] }
   0x9   :  { %v59_v12 = vld [vmem:[%s266_s3 + $0x30] sm:$0xff]  ;;  %v58_v13 = vld [vmem:[%s266_s3 + $0x28] sm:$0xff]  ;;  %v57_v14 = vld [vmem:[%s266_s3 + $0x20] sm:$0xff] }
   0xa   :  { %77 = vmatpush.msra.mxu1 %v64_v7  ;;  %v56_v15 = vld [vmem:[%s266_s3 + $0x18] sm:$0xff]  ;;  %v55_v16 = vld [vmem:[%s266_s3 + $0x10] sm:$0xff]  ;;  %v54_v17 = vld [vmem:[%s266_s3 + $0x8] sm:$0xff] }
   0xb   :  { %v53_v18 = vld [vmem:[%s266_s3] sm:$0xff] }
   0xc   :  { %78 = vmatpush.msra.mxu1 %v63_v8  ;;  %v132_v19 = vld [vmem:[%s265_s2] ss:$0 sm:$0xff]  ;;  %s164_s2 = smov [#allocation2]  }
   0xd   :  { %v133_v23 = vld [vmem:[%s267_s4] ss:$0 sm:$0xff]  ;;  %s118_s3 = sshll.u32 %s164_s2, 4  ;;  %s120_s4 = sshll.u32 %s268_s5, 4  ;;  %s119_s3 = int_to_ptr.vmem [resolvable:$true] %s118_s3  ;;  %s121_s4 = int_to_ptr.hbm [resolvable:$true] %s120_s4 }
   0xe   :  { %79 = vmatpush.msra.mxu1 %v62_v9 }
  0x10   :  { %80 = vmatpush.msra.mxu1 %v61_v10 }
  0x12   :  { %81 = vmatpush.msra.mxu1 %v60_v11 }
  0x14   :  { %82 = vmatpush.msra.mxu1 %v59_v12 }
  0x16   :  { %83 = vmatpush.msra.mxu1 %v58_v13 }
  0x18   :  { %84 = vmatpush.msra.mxu1 %v57_v14 }
  0x1a   :  { %85 = vmatpush.msra.mxu1 %v56_v15 }
  0x1c   :  { %86 = vmatpush.msra.mxu1 %v55_v16 }
  0x1e   :  { %87 = vmatpush.msra.mxu1 %v54_v17 }
  0x20   :  { %88 = vmatpush.msra.mxu1 %v53_v18 }
  0x82   :  { %v49_v20 = vpop.f32.mrf.mxu0 }
  0x83   :  { %v50_v21 = vadd.f32 %v132_v19, %v49_v20 }
  0x85   :  { %v52_v22 = vmax.f32 %v50_v21, 0.0 }
  0x87   :  { %89 = vmatmul.f32.vlgmr.msra.gmra.mxu1 %v52_v22 }
 0x104   :  { %v90_v24 = vpop.f32.mrf.mxu1 }
 0x105   :  { %v91_v25 = vadd.f32 %v133_v23, %v90_v24 }
 0x107   :  { %v130_v26 = vmul.f32 -1.442695, %v91_v25 }
 0x109   :  { %134 = vpow2.f32 %v130_v26 }
 0x10f   :  { %v135_v27 = vpop.eup %134 }
 0x110   :  { %v96_v28 = vadd.f32 1.0, %v135_v27 }
 0x112   :  { %136 = vrcp.f32 %v96_v28  ;;  %v108_v32 = vand.u32 2147483648, %v96_v28  ;;  %v106_v34 = vand.u32 2147483647, %v96_v28  ;;  %vm102_vm2 = vweird.f32 %v96_v28 }
 0x114   :  { %v109_v36 = vor.u32 1.1754944e-38, %v108_v32  ;;  %vm107_vm4 = vcmp.eq.f32.partialorder %v106_v34, 8.507059e+37 }
 0x118   :  { %v137_v29 = vpop.eup %136 }
 0x119   :  { %v98_v30 = vmul.f32 %v137_v29, %v96_v28  ;;  %vm103_vm1 = vweird.f32 %v137_v29 }
 0x11a   :  { %vm104_vm3 = vmor %vm102_vm2, %vm103_vm1 }
 0x11b   :  { %v99_v31 = vsub.f32 1.0, %v98_v30 }
 0x11d   :  { %v100_v33 = vmul.f32 %v137_v29, %v99_v31 }
 0x11f   :  { %v101_v35 = vadd.f32 %v137_v29, %v100_v33 }
 0x121   :  { %v105_v37 = vsel %vm104_vm3, %v137_v29, %v101_v35 }
 0x122   :  { %v110_v38 = vsel %vm107_vm4, %v109_v36, %v105_v37 }
 0x123   :  { %112 = vst.msk [vmem:[#allocation2] sm:$0xff] %vm28_vm0, %v110_v38 }
 0x124   :  { %123 = dma.vmem_to_hbm [thread:$0]  %s119_s3, 128, %s121_s4, [#allocation3]  }
 0x125   :  { %162 = dma.done.wait [#allocation3], 128  }
 0x126   :  { %163 = vsyncadd [#allocation3], 4294967168 }
 0x127   :  { %128 = vsyncpa [#allocation3], 1 }

</bundles_post_ra>
